<compile_context>
chip_gen: v5e
topology: v5e:2x2
jax: 0.10.0
libtpu: 0.0.40
codegen_flags: <defaults>
</compile_context>

<pallas_src>
import functools

import jax
import jax.numpy as jnp
from jax.experimental import pallas as pl
from jax.experimental.pallas import tpu as pltpu


def _combined_loss_kernel(x_ref, t_ref, out_ref, acc_ref, *,
                          num_classes, tile, hw, nb_per_split, compute_dtype):
    """One (C, TL) pixel tile of the CombinedLoss statistics.

    x_ref:   (1, C, TL)       logits tile (native dtype), pixels on the 128-lane axis
    t_ref:   (1, 1, TL)       int32 target class id per pixel
    out_ref: (1, 1, 3C+2, 1)  per-(split, n) reduced statistics, written on the last tile
    acc_ref: (3C+2, TL) f32   merged lane-partial accumulator slab (VMEM scratch):
                              rows [0,C)   sum probs*onehot  (dice intersection)
                              rows [C,2C)  sum probs          (dice denominator)
                              rows [2C,3C) sum onehot         (dice denominator)
                              row  3C      sum nll*ce_mask    (CE numerator)
                              row  3C+1    sum ce_mask        (CE denominator)
    """
    C = num_classes
    s_idx = pl.program_id(0)   # pixel-range split (second v7x core when N is small)
    i = pl.program_id(2)       # pixel tile inside this split (reduction axis)

    logits = x_ref[0].astype(jnp.float32)     # (C, TL) f32 compute
    tgt = t_ref[0]                            # (1, TL) i32

    # Validity of each pixel column.  The tail block may extend past hw (no wrapper
    # pad); the DMA'd tail contents are unspecified, so zero them BEFORE max/exp.
    g = s_idx * nb_per_split + i
    pix = g * tile + jax.lax.broadcasted_iota(jnp.int32, (1, tile), 1)
    valid_b = pix < hw                                     # (1, TL) bool
    valid = valid_b.astype(jnp.float32)
    logits = jnp.where(valid_b, logits, 0.0)

    # softmax / log-softmax over the class (sublane) axis
    m = jnp.max(logits, axis=0, keepdims=True)             # (1, TL)
    shifted = logits - m
    e = jnp.exp(shifted.astype(compute_dtype))             # (C, TL); bf16 EUP on v6e/v7x
    s = jnp.sum(e.astype(jnp.float32), axis=0, keepdims=True)     # (1, TL) f32
    lse = jnp.log(s) + m                                    # (1, TL) f32 (CE path stays f32)
    probs = e * pl.reciprocal(s, approx=True).astype(compute_dtype)   # (C, TL)

    # one-hot targets via class-id iota on the sublane axis
    cls_ids = jax.lax.broadcasted_iota(jnp.int32, (C, tile), 0)
    onehot_b = cls_ids == tgt                                # (C, TL) bool
    onehot = onehot_b.astype(jnp.float32)

    # cross entropy (ignore_index = 0, reduction = 'mean') — lane partials only
    logit_at_t = jnp.sum(logits * onehot, axis=0, keepdims=True)     # (1, TL)
    nll = lse - logit_at_t
    ce_mask = valid * (tgt != 0).astype(jnp.float32)

    # dice partials (padding masked)
    onehot_vb = jnp.logical_and(onehot_b, valid_b)           # (C, TL) bool
    inter = probs * onehot_vb.astype(compute_dtype)
    probs_v = probs * valid_b.astype(compute_dtype)

    # single merged slab -> one dense read-modify-write of the accumulator
    slab = jnp.concatenate(
        [inter.astype(jnp.float32),
         probs_v.astype(jnp.float32),
         onehot_vb.astype(jnp.float32),
         nll * ce_mask,
         ce_mask],
        axis=0)                                              # (3C+2, TL)

    @pl.when(i == 0)
    def _():
        acc_ref[...] = slab

    @pl.when(i > 0)
    def _():
        acc_ref[...] += slab

    # collapse lane partials once per (split, n): one XLU cross-lane reduce,
    # tiny HBM writeback instead of a (3C+2, TL) f32 slab per n.
    @pl.when(i == pl.num_programs(2) - 1)
    def _():
        out_ref[0, 0] = jnp.sum(acc_ref[...], axis=1, keepdims=True)   # (3C+2, 1)


def _default_compute_dtype():
    # bf16 VPU/EUP exists on v6e / v7x; v5e (and older/unknown chips) stay in f32.
    try:
        kind = jax.devices()[0].device_kind.lower()
    except Exception:
        return jnp.float32
    if any(tag in kind for tag in ("v6", "v7", "tpu7", "trillium")):
        return jnp.bfloat16
    return jnp.float32


@functools.partial(
    jax.jit,
    static_argnames=("dice_weight", "ce_weight", "smooth", "tile", "compute_dtype"))
def _combined_loss_impl(inputs, targets, *, dice_weight, ce_weight, smooth, tile,
                        compute_dtype):
    N, C, H, W = inputs.shape
    hw = H * W
    acc_rows = 3 * C + 2

    # free views — no transpose, no pad, no dtype cast (bf16 logits stay bf16 in HBM)
    x = inputs.reshape(N, C, hw)
    t = targets.reshape(N, 1, hw).astype(jnp.int32)

    # pixel tile: as large as allowed (amortizes per-grid-step pipeline overhead),
    # lane-aligned (multiple of 128) and VMEM-bounded. Partial tail masked in-kernel.
    bytes_per_lane = (acc_rows * 4                   # f32 accumulator slab
                      + 2 * C * x.dtype.itemsize     # double-buffered logits block
                      + 2 * 4)                       # double-buffered targets block
    tl_vmem_cap = max(128, ((24 << 20) // bytes_per_lane) // 128 * 128)
    tl_cap = max(128, min((tile // 128) * 128, tl_vmem_cap))
    hw_lanes = pl.cdiv(hw, 128) * 128
    tl = min(hw_lanes, tl_cap)
    nb = pl.cdiv(hw, tl)

    # pixel-range split -> extra "parallel" axis so v7x's 2 TensorCores both get work
    # even when N == 1 (harmless on single-core v5e/v6e).
    splits = 2 if (nb >= 2 and nb % 2 == 0) else 1
    nb_ps = nb // splits

    kernel = functools.partial(
        _combined_loss_kernel, num_classes=C, tile=tl, hw=hw,
        nb_per_split=nb_ps, compute_dtype=compute_dtype)

    vmem_est = bytes_per_lane * tl + (1 << 20)
    cost = pl.CostEstimate(
        flops=12 * N * C * hw,
        transcendentals=N * (C + 2) * hw,
        bytes_accessed=int(x.size * x.dtype.itemsize + t.size * 4
                           + splits * N * acc_rows * 4))

    stats = pl.pallas_call(
        kernel,
        out_shape=jax.ShapeDtypeStruct((splits, N, acc_rows, 1), jnp.float32),
        grid_spec=pltpu.PrefetchScalarGridSpec(
            num_scalar_prefetch=0,
            grid=(splits, N, nb_ps),
            in_specs=[
                pl.BlockSpec((1, C, tl), lambda s, n, i: (n, 0, s * nb_ps + i)),
                pl.BlockSpec((1, 1, tl), lambda s, n, i: (n, 0, s * nb_ps + i)),
            ],
            out_specs=pl.BlockSpec((1, 1, acc_rows, 1), lambda s, n, i: (s, n, 0, 0)),
            scratch_shapes=[pltpu.VMEM((acc_rows, tl), jnp.float32)],
        ),
        compiler_params=pltpu.CompilerParams(
            dimension_semantics=("parallel", "parallel", "arbitrary"),
            vmem_limit_bytes=int(min(max(2 * vmem_est, 16 << 20), 48 << 20))),
        cost_estimate=cost,
    )(x, t)

    # tiny scalar finalization on (3C+2,) totals
    totals = jnp.sum(stats, axis=(0, 1, 3))
    inter, psum, osum = totals[:C], totals[C:2 * C], totals[2 * C:3 * C]
    dice = (2.0 * inter + smooth) / (psum + osum + smooth)
    dice_loss = 1.0 - jnp.mean(dice)

    # matches PyTorch CrossEntropyLoss(ignore_index=0, reduction='mean'):
    # intentionally NaN if every pixel is the ignore index.
    ce_loss = totals[3 * C] / totals[3 * C + 1]

    return ce_weight * ce_loss + dice_weight * dice_loss


def combined_loss(inputs, targets, *, dice_weight=1.0, ce_weight=1.0, smooth=1e-5,
                  tile=32768, compute_dtype=None):
    """inputs: (N, C, H, W) logits (any float dtype); targets: (N, H, W) int class ids."""
    if compute_dtype is None:
        compute_dtype = _default_compute_dtype()
    return _combined_loss_impl(
        inputs, targets,
        dice_weight=float(dice_weight), ce_weight=float(ce_weight),
        smooth=float(smooth), tile=int(tile), compute_dtype=jnp.dtype(compute_dtype))


def _reference(inputs, targets, dice_weight=1.0, ce_weight=1.0, smooth=1e-5):
    """Pure-JAX reference matching the PyTorch CombinedLoss semantics."""
    C = inputs.shape[1]
    logits = inputs.astype(jnp.float32)
    logp = jax.nn.log_softmax(logits, axis=1)
    probs = jnp.exp(logp)
    onehot = jnp.transpose(jax.nn.one_hot(targets, C, dtype=jnp.float32), (0, 3, 1, 2))
    nll = -jnp.take_along_axis(logp, targets[:, None], axis=1)[:, 0]
    mask = (targets != 0).astype(jnp.float32)
    ce_loss = jnp.sum(nll * mask) / jnp.sum(mask)
    inter = jnp.sum(probs * onehot, axis=(0, 2, 3))
    union = jnp.sum(probs, axis=(0, 2, 3)) + jnp.sum(onehot, axis=(0, 2, 3))
    dice = (2.0 * inter + smooth) / (union + smooth)
    dice_loss = 1.0 - jnp.mean(dice)
    return ce_weight * ce_loss + dice_weight * dice_loss


if __name__ == "__main__":
    key = jax.random.PRNGKey(0)
    k1, k2 = jax.random.split(key)
    N, C, H, W = 2, 10, 16, 16            # n_classes = CLASS_NUM = 10 from the UNet spec
    logits = jax.random.normal(k1, (N, C, H, W), dtype=jnp.float32)
    targets = jax.random.randint(k2, (N, H, W), 0, C).astype(jnp.int32)
    ref = _reference(logits, targets)

    # 1) strict f32 path (single pixel tile per image)
    loss_f32 = jax.block_until_ready(combined_loss(logits, targets, compute_dtype=jnp.float32))
    assert jnp.abs(loss_f32 - ref) < 1e-3, (loss_f32, ref)

    # 2) default path (bf16 exp / dice partials on v6e/v7x, f32 elsewhere)
    loss_auto = jax.block_until_ready(combined_loss(logits, targets))
    assert jnp.abs(loss_auto - ref) < 5e-3, (loss_auto, ref)

    # 3) multi-tile + pixel-split path, bf16 logits in HBM (exercises the accumulator
    #    loop and the v7x core-split axis)
    k3, k4 = jax.random.split(k2)
    logits2 = jax.random.normal(k3, (1, C, 64, 64), dtype=jnp.bfloat16)
    targets2 = jax.random.randint(k4, (1, 64, 64), 0, C).astype(jnp.int32)
    ref2 = _reference(logits2, targets2)
    loss2 = jax.block_until_ready(
        combined_loss(logits2, targets2, tile=1024, compute_dtype=jnp.float32))
    assert jnp.abs(loss2 - ref2) < 1e-3, (loss2, ref2)

    # 4) non-multiple-of-128 image: partial tail block handled in-kernel (no wrapper pad)
    k5, k6 = jax.random.split(k4)
    logits3 = jax.random.normal(k5, (1, C, 20, 20), dtype=jnp.float32)
    targets3 = jax.random.randint(k6, (1, 20, 20), 0, C).astype(jnp.int32)
    ref3 = _reference(logits3, targets3)
    loss3 = jax.block_until_ready(
        combined_loss(logits3, targets3, compute_dtype=jnp.float32))
    assert jnp.abs(loss3 - ref3) < 1e-3, (loss3, ref3)

    print("KERNEL_OK")
</pallas_src>

<mosaic_0001>
module attributes {stable_mosaic.version = 11 : i64} {
  func.func @_combined_loss_kernel(%arg0: i32, %arg1: i32, %arg2: i32, %arg3: memref<1x10x256xf32, #tpu.memory_space<vmem>>, %arg4: memref<1x1x256xi32, #tpu.memory_space<vmem>>, %arg5: memref<1x1x32x1xf32, #tpu.memory_space<vmem>>, %arg6: memref<32x256xf32, #tpu.memory_space<vmem>>) attributes {dimension_semantics = [#tpu.dimension_semantics<parallel>, #tpu.dimension_semantics<parallel>, #tpu.dimension_semantics<arbitrary>], iteration_bounds = array<i64: 1, 2, 1>, scalar_prefetch = 0 : i64, scratch_operands = 1 : i64, tpu.core_type = #tpu.core_type<tc>, window_params = [{transform_indices = @transform_0, window_bounds = array<i64: 1, 10, 256>}, {transform_indices = @transform_1, window_bounds = array<i64: 1, 1, 256>}, {transform_indices = @transform_2, window_bounds = array<i64: 1, 1, 32, 1>}]} {
    %c0 = arith.constant 0 : index
    %c0_0 = arith.constant 0 : index
    %c0_1 = arith.constant 0 : index
    %0 = vector.load %arg3[%c0, %c0_0, %c0_1] : memref<1x10x256xf32, #tpu.memory_space<vmem>>, vector<1x10x256xf32>
    %1 = vector.shape_cast %0 : vector<1x10x256xf32> to vector<10x256xf32>
    %c0_2 = arith.constant 0 : index
    %c0_3 = arith.constant 0 : index
    %c0_4 = arith.constant 0 : index
    %2 = vector.load %arg4[%c0_2, %c0_3, %c0_4] : memref<1x1x256xi32, #tpu.memory_space<vmem>>, vector<1x1x256xi32>
    %3 = vector.shape_cast %2 : vector<1x1x256xi32> to vector<1x256xi32>
    %c1_i32 = arith.constant 1 : i32
    %4 = arith.muli %arg0, %c1_i32 : i32
    %5 = arith.addi %4, %arg2 : i32
    %c256_i32 = arith.constant 256 : i32
    %6 = arith.muli %5, %c256_i32 : i32
    %7 = tpu.iota {dimensions = array<i32: 1>} : vector<1x256xi32>
    %8 = vector.broadcast %6 : i32 to vector<1x256xi32>
    %9 = arith.addi %8, %7 : vector<1x256xi32>
    %c256_i32_5 = arith.constant 256 : i32
    %10 = vector.broadcast %c256_i32_5 : i32 to vector<1x256xi32>
    %11 = arith.cmpi slt, %9, %10 : vector<1x256xi32>
    %12 = arith.extui %11 : vector<1x256xi1> to vector<1x256xi32>
    %13 = arith.sitofp %12 : vector<1x256xi32> to vector<1x256xf32>
    %cst = arith.constant 0.000000e+00 : f32
    %14 = vector.shape_cast %11 : vector<1x256xi1> to vector<1x256xi1>
    %15 = vector.broadcast %14 : vector<1x256xi1> to vector<10x256xi1>
    %16 = vector.broadcast %cst : f32 to vector<10x256xf32>
    %17 = arith.select %15, %1, %16 : vector<10x256xi1>, vector<10x256xf32>
    %cst_6 = arith.constant dense<0xFF800000> : vector<256xf32>
    %18 = vector.multi_reduction <maximumf>, %17, %cst_6 [0] : vector<10x256xf32> to vector<256xf32>
    %19 = vector.shape_cast %18 : vector<256xf32> to vector<1x256xf32>
    %20 = vector.broadcast %19 : vector<1x256xf32> to vector<10x256xf32>
    %21 = arith.subf %17, %20 : vector<10x256xf32>
    %22 = math.exp %21 : vector<10x256xf32>
    %cst_7 = arith.constant dense<0.000000e+00> : vector<256xf32>
    %23 = vector.multi_reduction <add>, %22, %cst_7 [0] : vector<10x256xf32> to vector<256xf32>
    %24 = vector.shape_cast %23 : vector<256xf32> to vector<1x256xf32>
    %25 = math.log %24 : vector<1x256xf32>
    %26 = arith.addf %25, %19 : vector<1x256xf32>
    %27 = tpu.reciprocal %24 {approx = true} : vector<1x256xf32> -> vector<1x256xf32>
    %28 = vector.broadcast %27 : vector<1x256xf32> to vector<10x256xf32>
    %29 = arith.mulf %22, %28 : vector<10x256xf32>
    %30 = tpu.iota {dimensions = array<i32: 0>} : vector<10x256xi32>
    %31 = vector.broadcast %3 : vector<1x256xi32> to vector<10x256xi32>
    %32 = arith.cmpi eq, %30, %31 : vector<10x256xi32>
    %33 = arith.extui %32 : vector<10x256xi1> to vector<10x256xi32>
    %34 = arith.sitofp %33 : vector<10x256xi32> to vector<10x256xf32>
    %35 = arith.mulf %17, %34 : vector<10x256xf32>
    %cst_8 = arith.constant dense<0.000000e+00> : vector<256xf32>
    %36 = vector.multi_reduction <add>, %35, %cst_8 [0] : vector<10x256xf32> to vector<256xf32>
    %37 = vector.shape_cast %36 : vector<256xf32> to vector<1x256xf32>
    %38 = arith.subf %26, %37 : vector<1x256xf32>
    %c0_i32 = arith.constant 0 : i32
    %39 = vector.broadcast %c0_i32 : i32 to vector<1x256xi32>
    %40 = arith.cmpi ne, %3, %39 : vector<1x256xi32>
    %41 = arith.extui %40 : vector<1x256xi1> to vector<1x256xi32>
    %42 = arith.sitofp %41 : vector<1x256xi32> to vector<1x256xf32>
    %43 = arith.mulf %13, %42 : vector<1x256xf32>
    %44 = vector.broadcast %11 : vector<1x256xi1> to vector<10x256xi1>
    %45 = arith.andi %32, %44 : vector<10x256xi1>
    %46 = arith.extui %45 : vector<10x256xi1> to vector<10x256xi32>
    %47 = arith.sitofp %46 : vector<10x256xi32> to vector<10x256xf32>
    %48 = arith.mulf %29, %47 : vector<10x256xf32>
    %49 = arith.extui %11 : vector<1x256xi1> to vector<1x256xi32>
    %50 = arith.sitofp %49 : vector<1x256xi32> to vector<1x256xf32>
    %51 = vector.broadcast %50 : vector<1x256xf32> to vector<10x256xf32>
    %52 = arith.mulf %29, %51 : vector<10x256xf32>
    %53 = arith.extui %45 : vector<10x256xi1> to vector<10x256xi32>
    %54 = arith.sitofp %53 : vector<10x256xi32> to vector<10x256xf32>
    %55 = arith.mulf %38, %43 : vector<1x256xf32>
    %56 = tpu.concatenate %48, %52, %54, %55, %43 in 0 : vector<10x256xf32>, vector<10x256xf32>, vector<10x256xf32>, vector<1x256xf32>, vector<1x256xf32> -> vector<32x256xf32>
    %c0_i32_9 = arith.constant 0 : i32
    %57 = arith.cmpi eq, %arg2, %c0_i32_9 : i32
    %58 = arith.extui %57 : i1 to i32
    %c0_i32_10 = arith.constant 0 : i32
    %59 = arith.cmpi ne, %58, %c0_i32_10 : i32
    scf.if %59 {
      %c0_15 = arith.constant 0 : index
      %c0_16 = arith.constant 0 : index
      %66 = vector.load %arg6[%c0_15, %c0_16] : memref<32x256xf32, #tpu.memory_space<vmem>>, vector<32x256xf32>
      tpu.vector_store %arg6[%c0_15, %c0_16], %56 {strides = array<i32>} : memref<32x256xf32, #tpu.memory_space<vmem>>, vector<32x256xf32>,
    } else {
    }
    %c0_i32_11 = arith.constant 0 : i32
    %60 = arith.cmpi sgt, %arg2, %c0_i32_11 : i32
    %61 = arith.extui %60 : i1 to i32
    %c0_i32_12 = arith.constant 0 : i32
    %62 = arith.cmpi ne, %61, %c0_i32_12 : i32
    scf.if %62 {
      %c0_15 = arith.constant 0 : index
      %c0_16 = arith.constant 0 : index
      %66 = vector.load %arg6[%c0_15, %c0_16] : memref<32x256xf32, #tpu.memory_space<vmem>>, vector<32x256xf32>
      %67 = arith.addf %66, %56 : vector<32x256xf32>
      %c0_17 = arith.constant 0 : index
      %c0_18 = arith.constant 0 : index
      %68 = vector.load %arg6[%c0_17, %c0_18] : memref<32x256xf32, #tpu.memory_space<vmem>>, vector<32x256xf32>
      tpu.vector_store %arg6[%c0_17, %c0_18], %67 {strides = array<i32>} : memref<32x256xf32, #tpu.memory_space<vmem>>, vector<32x256xf32>,
    } else {
    }
    %c0_i32_13 = arith.constant 0 : i32
    %63 = arith.cmpi eq, %arg2, %c0_i32_13 : i32
    %64 = arith.extui %63 : i1 to i32
    %c0_i32_14 = arith.constant 0 : i32
    %65 = arith.cmpi ne, %64, %c0_i32_14 : i32
    scf.if %65 {
      %c0_15 = arith.constant 0 : index
      %c0_16 = arith.constant 0 : index
      %66 = vector.load %arg6[%c0_15, %c0_16] : memref<32x256xf32, #tpu.memory_space<vmem>>, vector<32x256xf32>
      %cst_17 = arith.constant dense<0.000000e+00> : vector<32xf32>
      %67 = vector.multi_reduction <add>, %66, %cst_17 [1] : vector<32x256xf32> to vector<32xf32>
      %68 = vector.shape_cast %67 : vector<32xf32> to vector<32x1xf32>
      %c0_18 = arith.constant 0 : index
      %c0_19 = arith.constant 0 : index
      %c0_20 = arith.constant 0 : index
      %c0_21 = arith.constant 0 : index
      %69 = vector.load %arg5[%c0_18, %c0_19, %c0_20, %c0_21] : memref<1x1x32x1xf32, #tpu.memory_space<vmem>>, vector<1x1x32x1xf32>
      %70 = vector.shape_cast %69 : vector<1x1x32x1xf32> to vector<32x1xf32>
      %71 = vector.shape_cast %68 : vector<32x1xf32> to vector<1x1x32x1xf32>
      tpu.vector_store %arg5[%c0_18, %c0_19, %c0_20, %c0_21], %71 {strides = array<i32>} : memref<1x1x32x1xf32, #tpu.memory_space<vmem>>, vector<1x1x32x1xf32>,
    } else {
    }
    return
  }
  func.func @transform_0(%arg0: i32, %arg1: i32, %arg2: i32) -> (i32, i32, i32) {
    %c1_i32 = arith.constant 1 : i32
    %0 = arith.muli %arg0, %c1_i32 : i32
    %1 = arith.addi %0, %arg2 : i32
    %c0_i32 = arith.constant 0 : i32
    %c0_i32_0 = arith.constant 0 : i32
    return %arg1, %c0_i32, %1 : i32, i32, i32
  }
  func.func @transform_1(%arg0: i32, %arg1: i32, %arg2: i32) -> (i32, i32, i32) {
    %c1_i32 = arith.constant 1 : i32
    %0 = arith.muli %arg0, %c1_i32 : i32
    %1 = arith.addi %0, %arg2 : i32
    %c0_i32 = arith.constant 0 : i32
    %c0_i32_0 = arith.constant 0 : i32
    return %arg1, %c0_i32, %1 : i32, i32, i32
  }
  func.func @transform_2(%arg0: i32, %arg1: i32, %arg2: i32) -> (i32, i32, i32, i32) {
    %c0_i32 = arith.constant 0 : i32
    %c0_i32_0 = arith.constant 0 : i32
    %c0_i32_1 = arith.constant 0 : i32
    return %arg0, %arg1, %c0_i32, %c0_i32_0 : i32, i32, i32, i32
  }
}

</mosaic_0001>

<bundles_post_ra>
// kernel: _combined_loss_impl.1
= control target key start
LH: loop header
LB: loop body
LE: loop exit
PB: predicated region body
PF: predicated region fallthrough
CT: control target
= control target key end

     0   :  { %s719_s9 = smov 0   ;;  %s721_s10 = smov 0   ;;  %s812_s0 = inlined_call_operand.vmem [shape: f32[2,10,256], index: 0, kind: input, shape index: {}]   ;;  %s813_s1 = inlined_call_operand.vmem [shape: s32[2,1,256], index: 1, kind: input, shape index: {}]   ;;  %s814_s2 = inlined_call_operand.vmem [shape: f32[1,2,32,1], index: 2, kind: output, shape index: {}]  }
   0x1   :  { %s723_s11 = smov 0  }
   0x2 LB: > { %s27_s12 = sadd.s32 1, %s697_s10  ;;  %p619_p0 = scmp.ge.s32.totalorder %s701_s11, 1  ;;  %s701_s11 = sphi %s723_s11, %s12_s11   ;;  %s697_s10 = sphi %s721_s10, %s816_s10   ;;  %s693_s9 = sphi %s719_s9, %s815_s9  }
   0x3   : > { %p29_p1 = scmp.ge.s32.totalorder %s27_s12, 2  ;;  %p164_p2 = scmp.lt.s32.totalorder %s701_s11, 3 }
   0x5   : > { %s818_s12 = smov (%p29_p1, %s27_s12), 0  ;;  %p165_p3 = pnand %p619_p0, %p164_p2 }
   0x6   : > { %p206_p4 = scmp.lt.s32.totalorder (!%p165_p3), %s693_s9, 1 }
   0x7   : > { %168 = sbr.rel (%p165_p3) target bundleno = 201 (0xc9), region = 28 }
   0xc   : > { %s820_s9 = smov (!%p206_p4, %s693_s9), 1  ;;  %vm261_vm0 = vcmask 1041408   ;;  %v318_v7 = vlaneseq  ;;  %v703_v30 = vmov 0.0   ;;  %vm407_vm6 = vcmask 1043456  }
   0xd   : > { %s636_s13 = sshll.u32 %s820_s9, 5  ;;  %s622_s17 = sshll.u32 %s820_s9, 1  ;;  %vm434_vm7 = vcmask 1045504   ;;  %vm437_vm8 = vcmask 1046528   ;;  %vm503_vm9 = vcmask 7168  }
   0xe   : > { %s213_s16 = scalar_lea.vmem %s812_s0, %s636_s13  ;;  %s224_s20 = scalar_lea.vmem %s813_s1, %s622_s17  ;;  %v319_v12 = vshrl.u32 %v318_v7, 7 }
   0xf   : > { %v236_v0 = vld [vmem:[%s213_s16] sm:$0xff]  ;;  %v237_v1 = vld [vmem:[%s213_s16 + $0x8] sm:$0xff]  ;;  %v238_v2 = vld [vmem:[%s213_s16 + $0x10] sm:$0x3]  ;;  %s235_s23 = scalar_lea.vmem %s814_s2, %s636_s13 }
  0x10   : > { %v239_v3 = vld [vmem:[%s213_s16 + $0x18] sm:$0x3]  ;;  %v262_v4 = vsel %vm261_vm0, %v238_v2, -inf  ;;  %v751_v13 = vld [vmem:[%s224_s20] sm:$0x3]  ;;  %v320_v19 = vadd.s32 8, %v319_v12 }
  0x11   : > { %v263_v5 = vmax.f32 %v236_v0, %v262_v4  ;;  %v270_v6 = vsel %vm261_vm0, %v239_v3, -inf  ;;  %v321_v18 = vperm.slane %v751_v13, 0  ;;  %v322_v21 = vperm.slane %v751_v13, 1 }
  0x12   : > { %v271_v8 = vmax.f32 %v237_v1, %v270_v6  ;;  %vm357_vm5 = vcmp.ne.s32.totalorder %v751_v13, 0 }
  0x13   : > { %v264_v9 = vrot.slane %v263_v5, 4  ;;  %vm325_vm1 = vcmp.eq.s32.totalorder %v320_v19, %v321_v18  ;;  %vm326_vm2 = vcmp.eq.s32.totalorder %v320_v19, %v322_v21  ;;  %vm323_vm3 = vcmp.eq.s32.totalorder %v319_v12, %v321_v18 }
  0x14   : > { %v272_v10 = vrot.slane %v271_v8, 4  ;;  %v763_v31 = vsel %vm325_vm1, 1.0, %v703_v30  ;;  %vm324_vm4 = vcmp.eq.s32.totalorder %v319_v12, %v322_v21  ;;  %v765_v34 = vsel %vm326_vm2, 1.0, %v703_v30 }
  0x15   : > { %v265_v11 = vmax.f32 %v263_v5, %v264_v9  ;;  %v767_v37 = vsel %vm323_vm3, 1.0, %v703_v30  ;;  %v337_v38 = vmul.f32 %v763_v31, %v238_v2  ;;  %v770_v39 = vsel %vm324_vm4, 1.0, %v703_v30 }
  0x16   : > { %v273_v14 = vmax.f32 %v271_v8, %v272_v10  ;;  %v338_v40 = vmul.f32 %v765_v34, %v239_v3  ;;  %v335_v41 = vmul.f32 %v767_v37, %v236_v0  ;;  %v336_v42 = vmul.f32 %v770_v39, %v237_v1 }
  0x17   : > { %v266_v15 = vrot.slane %v265_v11, 2  ;;  %v339_v43 = vsel %vm261_vm0, %v337_v38, 0.0 }
  0x18   : > { %v274_v16 = vrot.slane %v273_v14, 2  ;;  %v347_v44 = vsel %vm261_vm0, %v338_v40, 0.0  ;;  %v340_v47 = vadd.f32 %v339_v43, %v335_v41 }
  0x19   : > { %v267_v17 = vmax.f32 %v265_v11, %v266_v15  ;;  %v348_v49 = vadd.f32 %v347_v44, %v336_v42 }
  0x1a   : > { %v275_v20 = vmax.f32 %v273_v14, %v274_v16  ;;  %v341_v55 = vrot.slane %v340_v47, 4  ;;  %v629_v14 = vsel %vm357_vm5, 1.0, %v703_v30  ;;  %v408_v16 = vrot.slane %v767_v37, 4 }
  0x1b   : > { %v268_v22 = vrot.slane %v267_v17, 1  ;;  %v349_v57 = vrot.slane %v348_v49, 4 }
  0x1c   : > { %v276_v23 = vrot.slane %v275_v20, 1  ;;  %v342_v61 = vadd.f32 %v341_v55, %v340_v47 }
  0x1d   : > { %v755_v24 = vmax.f32 %v267_v17, %v268_v22  ;;  %v350_v63 = vadd.f32 %v349_v57, %v348_v49  ;;  %v409_v17 = vrot.slane %v770_v39, 4 }
  0x1e   : > { %v757_v25 = vmax.f32 %v275_v20, %v276_v23 }
  0x1f   : > { %v278_v26 = vsub.f32 %v236_v0, %v755_v24  ;;  %v280_v27 = vsub.f32 %v238_v2, %v755_v24  ;;  %v351_v5 = vrot.slane %v350_v63, 2 }
  0x20   : > { %v279_v28 = vsub.f32 %v237_v1, %v757_v25  ;;  %v281_v29 = vsub.f32 %v239_v3, %v757_v25  ;;  %v343_v3 = vrot.slane %v342_v61, 2 }
  0x21   : > { %v282_v32 = vmul.f32 1.442695, %v278_v26  ;;  %v286_v33 = vmul.f32 1.442695, %v280_v27  ;;  %v352_v10 = vadd.f32 %v351_v5, %v350_v63 }
  0x22   : > { %v284_v35 = vmul.f32 1.442695, %v279_v28  ;;  %v288_v36 = vmul.f32 1.442695, %v281_v29  ;;  %v344_v9 = vadd.f32 %v343_v3, %v342_v61  ;;  %v361_v28 = vperm.slane %v629_v14, 0 }
  0x23   : > { %663 = vpow2.f32 %v282_v32  ;;  %v353_v12 = vrot.slane %v352_v10, 1 }
  0x24   : > { %665 = vpow2.f32 %v284_v35  ;;  %v345_v11 = vrot.slane %v344_v9, 1 }
  0x25   : > { %667 = vpow2.f32 %v286_v33  ;;  %v354_v27 = vadd.f32 %v353_v12, %v352_v10  ;;  %v362_v33 = vperm.slane %v629_v14, 1 }
  0x26   : > { %669 = vpow2.f32 %v288_v36  ;;  %v346_v21 = vadd.f32 %v345_v11, %v344_v9 }
  0x29   : > { %v664_v45 = vpop.eup %663 }
  0x2a   : > { %v666_v46 = vpop.eup %665 }
  0x2b   : > { %v668_v48 = vpop.eup %667 }
  0x2c   : > { %v670_v50 = vpop.eup %669  ;;  %v290_v51 = vsel %vm261_vm0, %v668_v48, 0.0 }
  0x2d   : > { %v291_v52 = vadd.f32 %v664_v45, %v290_v51  ;;  %v298_v53 = vsel %vm261_vm0, %v670_v50, 0.0 }
  0x2e   : > { %v299_v54 = vadd.f32 %v666_v46, %v298_v53 }
  0x2f   : > { %v292_v56 = vrot.slane %v291_v52, 4 }
  0x30   : > { %v300_v58 = vrot.slane %v299_v54, 4 }
  0x31   : > { %v293_v59 = vadd.f32 %v292_v56, %v291_v52 }
  0x32   : > { %v301_v60 = vadd.f32 %v300_v58, %v299_v54 }
  0x33   : > { %v294_v62 = vrot.slane %v293_v59, 2 }
  0x34   : > { %v302_v0 = vrot.slane %v301_v60, 2 }
  0x35   : > { %v295_v1 = vadd.f32 %v294_v62, %v293_v59  ;;  %v427_v59 = vrot.slane %v362_v33, 1 }
  0x36   : > { %v303_v2 = vadd.f32 %v302_v0, %v301_v60 }
  0x37   : > { %v296_v4 = vrot.slane %v295_v1, 1 }
  0x38   : > { %v304_v6 = vrot.slane %v303_v2, 1 }
  0x39   : > { %v297_v7 = vadd.f32 %v296_v4, %v295_v1 }
  0x3a   : > { %v305_v8 = vadd.f32 %v304_v6, %v303_v2 }
  0x3b   : > { %671 = vrcp.f32 %v297_v7 }
  0x3c   : > { %673 = vrcp.f32 %v305_v8 }
  0x3d   : > { %675 = vlog2.f32 %v297_v7 }
  0x3e   : > { %677 = vlog2.f32 %v305_v8 }
  0x41   : > { %v672_v15 = vpop.eup %671 }
  0x42   : > { %v674_v18 = vpop.eup %673  ;;  %v314_v19 = vmul.f32 %v672_v15, %v664_v45  ;;  %v316_v20 = vmul.f32 %v672_v15, %v668_v48 }
  0x43   : > { %v676_v22 = vpop.eup %675  ;;  %v315_v23 = vmul.f32 %v674_v18, %v666_v46  ;;  %v317_v26 = vmul.f32 %v674_v18, %v670_v50  ;;  %v412_v50 = vrot.slane %v765_v34, 4 }
  0x44   : > { %v678_v13 = vpop.eup %677  ;;  %v393_v29 = vrot.slane %v314_v19, 6  ;;  %v395_v32 = vrot.slane %v316_v20, 6  ;;  %v379_v30 = vmul.f32 %v767_v37, %v314_v19  ;;  %v381_v40 = vmul.f32 %v763_v31, %v316_v20 }
  0x45   : > { %v394_v35 = vrot.slane %v315_v23, 6  ;;  %v397_v36 = vrot.slane %v317_v26, 6  ;;  %v380_v38 = vmul.f32 %v770_v39, %v315_v23  ;;  %v382_v42 = vmul.f32 %v765_v34, %v317_v26 }
  0x46   : > { %v396_v41 = vsel %vm261_vm0, %v393_v29, %v395_v32  ;;  %v307_v43 = vmul.f32 0.6931472, %v676_v22  ;;  %v309_v44 = vmul.f32 0.6931472, %v678_v13  ;;  %v410_v37 = vrot.slane %v763_v31, 4 }
  0x47   : > { %v398_v45 = vsel %vm261_vm0, %v394_v35, %v397_v36  ;;  %v432_v46 = vsel %vm407_vm6, %v396_v41, %v408_v16  ;;  %v491_v47 = vadd.f32 %v380_v38, %v379_v30  ;;  %v430_v52 = vsel %vm261_vm0, %v381_v40, %v393_v29 }
  0x48   : > { %v433_v48 = vsel %vm407_vm6, %v398_v45, %v409_v17  ;;  %v310_v49 = vadd.f32 %v307_v43, %v755_v24  ;;  %v311_v39 = vadd.f32 %v309_v44, %v757_v25  ;;  %v431_v53 = vsel %vm261_vm0, %v382_v42, %v394_v35 }
  0x49   : > { %v497_v51 = vadd.f32 %v433_v48, %v432_v46  ;;  %492 = vadd.xlane.f32.xlu0 %v491_v47  ;;  %v411_v31 = vsel %vm407_vm6, %v408_v16, %v410_v37  ;;  %v413_v24 = vsel %vm407_vm6, %v409_v17, %v412_v50  ;;  %v494_v58 = vadd.f32 %v431_v53, %v430_v52 }
  0x4a   : > { %v355_v54 = vsub.f32 %v310_v49, %v346_v21  ;;  %v356_v55 = vsub.f32 %v311_v39, %v354_v27  ;;  %v426_v25 = vrot.slane %v361_v28, 1 }
  0x4b   : > { %498 = vadd.xlane.f32.xlu1 %v497_v51 }
  0x4c   : > { %v387_v56 = vmul.f32 %v361_v28, %v355_v54  ;;  %v388_v57 = vmul.f32 %v362_v33, %v356_v55 }
  0x4e   : > { %v420_v34 = vrot.slane %v387_v56, 2  ;;  %v421_v60 = vrot.slane %v388_v57, 2 }
  0x50   : > { %v435_v61 = vsel %vm434_vm7, %v411_v31, %v420_v34  ;;  %v436_v62 = vsel %vm434_vm7, %v413_v24, %v421_v60 }
  0x51   : > { %495 = vadd.xlane.f32.xlu0 %v494_v58  ;;  %v438_v63 = vsel %vm437_vm8, %v435_v61, %v426_v25  ;;  %v439_v0 = vsel %vm437_vm8, %v436_v62, %v427_v59 }
  0x52   : > { %v500_v1 = vadd.f32 %v439_v0, %v438_v63 }
  0x54   : > { %501 = vadd.xlane.f32.xlu1 %v500_v1 }
  0xbc   : > { %v493_v2 = vpop.xlane.xlu0 %492 }
  0xbd   : > { %504 = vst.msk [vmem:[%s235_s23] sm:$0xff] %vm503_vm9, %v493_v2 }
  0xbe   : > { %v499_v3 = vpop.xlane.xlu1 %498 }
  0xbf   : > { %506 = vst.msk [vmem:[%s235_s23 + $0x10] sm:$0xff] %vm503_vm9, %v499_v3 }
  0xc4   : > { %v496_v4 = vpop.xlane.xlu0 %495 }
  0xc5   : > { %505 = vst.msk [vmem:[%s235_s23 + $0x8] sm:$0xff] %vm503_vm9, %v496_v4 }
  0xc7   : > { %v502_v5 = vpop.xlane.xlu1 %501 }
  0xc8   : > { %507 = vst.msk [vmem:[%s235_s23 + $0x18] sm:$0xff] %vm503_vm9, %v502_v5 }
  0xc9 PF: > { %s12_s11 = sadd.s32 1, %s701_s11   ;;  %s815_s9 = smov %s697_s10 }
  0xca   : > { %p9_p5 = scmp.ge.s32.totalorder %s12_s11, 4   ;;  %s816_s10 = smov %s818_s12 }
  0xcc   :  { %11 = sbr.rel (!%p9_p5) target bundleno = 2 (0x2), region = 73 }

</bundles_post_ra>
